<compile_context>
chip_gen: v6e
topology: v6e:2x2x1
jax: 0.10.0
libtpu: 0.0.40
codegen_flags: <defaults>
</compile_context>

<pallas_src>
from typing import NamedTuple, Optional

import jax
import jax.numpy as jnp
from jax.experimental import pallas as pl
from jax.experimental.pallas import tpu as pltpu


class UNetOutput(NamedTuple):
    sample: jax.Array


# ----------------------------- kernels --------------------------------------


def _unet_kernel(w_ref, bias_ref, x_ref, out_ref):
    """Synthetic UNet hot path only (residual_input is None).

    Full-tile math: acc is the whole [Bt, C, tile_p] block; every VPU op uses
    a dense vreg footprint and the result is emitted with a single store.
    """
    x = x_ref[...].astype(jnp.float32)                 # [Bt, C, P]
    w = w_ref[...]                                     # [C, C, 1], w[ci, co]
    C = x.shape[1]
    # NOTE: for large C (>=128) a jnp.dot / MXU formulation would win; latent
    # diffusion has tiny C, so C unrolled full-tile VPU FMAs are cheaper.
    acc = x[:, 0:1, :] * w[0:1]                        # [Bt, C, P]
    for ci in range(1, C):                             # C is tiny (e.g. 4)
        acc = acc + x[:, ci:ci + 1, :] * w[ci:ci + 1]
    acc = acc + bias_ref[...]                          # [Bt, C, 1] over lanes
    acc = acc * jax.nn.sigmoid(acc)                    # SiLU
    out_ref[...] = acc.astype(out_ref.dtype)


def _resdiff_kernel(w_ref, bias_ref, alpha_ref, x_ref, res_ref, out_ref):
    """Synthetic UNet fused with `sample + alpha * residual_input`."""
    x = x_ref[...].astype(jnp.float32)                 # [Bt, C, P]
    w = w_ref[...]                                     # [C, C, 1]
    C = x.shape[1]
    acc = x[:, 0:1, :] * w[0:1]
    for ci in range(1, C):
        acc = acc + x[:, ci:ci + 1, :] * w[ci:ci + 1]
    acc = acc + bias_ref[...]
    acc = acc * jax.nn.sigmoid(acc)                    # base_output.sample
    acc = acc + alpha_ref[0] * res_ref[...].astype(jnp.float32)
    out_ref[...] = acc.astype(out_ref.dtype)


# ----------------------------- tiling helpers --------------------------------


def _vmem_capacity_bytes() -> int:
    """Physical VMEM of the current chip; conservative fallback (v7x/TC)."""
    try:
        return int(pltpu.get_tpu_info().vmem_capacity_bytes)
    except Exception:
        return 64 << 20


def _choose_tiling(B: int, C: int, HW: int, n_streams: int, itemsize: int):
    """Pick (Bt, tile_p, num_p, HW_pad) for a (B//Bt, num_p) parallel grid."""
    HW128 = pl.cdiv(HW, 128) * 128
    vmem_cap = _vmem_capacity_bytes()
    # Keep all pipelined live buffers (n_streams, double-buffered) under ~1/4
    # of physical VMEM -> headroom for compiler scratch on every generation.
    budget = vmem_cap // 4
    max_block = max(C * 128 * itemsize, budget // (2 * n_streams))
    target_block = min(max_block, 4 << 20)             # 2-8 MiB sweet spot

    tile_p = (target_block // (C * itemsize)) // 128 * 128
    tile_p = min(HW128, max(128, tile_p))
    num_p = pl.cdiv(HW128, tile_p)

    # Batch tile: largest divisor of B that fits the block-size target while
    # keeping >= 2 parallel programs (v7x has two TensorCores).
    Bt = 1
    for cand in range(B, 0, -1):
        if B % cand:
            continue
        if cand * C * tile_p * itemsize > target_block:
            continue
        if cand > 1 and (B // cand) * num_p < 2:
            continue
        Bt = cand
        break

    # Still a 1-program grid (e.g. B == 1, one spatial tile): split spatially.
    while (B // Bt) * num_p < 2 and tile_p > 128:
        tile_p = max(128, (tile_p // 2) // 128 * 128)
        num_p = pl.cdiv(HW128, tile_p)

    HW_pad = num_p * tile_p
    return Bt, tile_p, num_p, HW_pad, vmem_cap


# ----------------------------- wrapper ---------------------------------------


def init_params(key, channels: int, ctx_dim: int):
    k_mix, k_b, k_t, k_ctx = jax.random.split(key, 4)
    return {
        "w_mix": jax.random.normal(k_mix, (channels, channels), jnp.float32) * 0.2,
        "b_mix": jax.random.normal(k_b, (channels,), jnp.float32) * 0.1,
        "w_time": jax.random.normal(k_t, (channels,), jnp.float32) * 0.01,
        "w_ctx": jax.random.normal(k_ctx, (ctx_dim, channels), jnp.float32) * 0.1,
        # nn.Parameter(torch.tensor(0.5))
        "alpha": jnp.array([0.5], dtype=jnp.float32),
    }


def residual_diffusion_forward(params, latents, timesteps, context,
                               residual_input: Optional[jax.Array] = None):
    B, C, H, W = latents.shape
    HW = H * W
    out_dtype = latents.dtype
    itemsize = jnp.dtype(out_dtype).itemsize

    # Conditioning glue (tiny, [B, C]): timestep embedding + mean-pooled
    # context projection, with b_mix folded in (one fewer kernel operand).
    t_emb = timesteps.astype(jnp.float32)[:, None] * params["w_time"][None, :]
    ctx_proj = jnp.mean(context, axis=1).astype(jnp.float32) @ params["w_ctx"]
    bias = (t_emb + ctx_proj + params["b_mix"][None, :]).astype(jnp.float32)
    bias3 = bias.reshape(B, C, 1)                       # (Bt, C, 1) VMEM blocks
    w3 = params["w_mix"].astype(jnp.float32).reshape(C, C, 1)

    n_streams = 2 if residual_input is None else 3      # x (+res) + out
    Bt, tile_p, num_p, HW_pad, vmem_cap = _choose_tiling(B, C, HW, n_streams,
                                                         itemsize)

    # NCHW-native: pure reshape (no transpose); pad spatial to a tile multiple
    # so every block/store is lane-dense and unmasked.
    x = latents.reshape(B, C, HW)
    if HW_pad != HW:
        x = jnp.pad(x, ((0, 0), (0, 0), (0, HW_pad - HW)))

    grid = (B // Bt, num_p)
    vblk = pl.BlockSpec((Bt, C, tile_p), lambda bi, pi: (bi, 0, pi))
    bias_blk = pl.BlockSpec((Bt, C, 1), lambda bi, pi: (bi, 0, 0))
    w_blk = pl.BlockSpec((C, C, 1), lambda bi, pi: (0, 0, 0))
    smem = pl.BlockSpec(memory_space=pltpu.MemorySpace.SMEM)
    cparams = pltpu.CompilerParams(
        dimension_semantics=("parallel", "parallel"),
        vmem_limit_bytes=int(vmem_cap // 2),
    )
    # (If per-step blocks stayed tiny and DMA were still exposed, the x/res
    #  BlockSpecs could additionally request pipeline_mode=pl.Buffered(3).)

    if residual_input is None:
        sample = pl.pallas_call(
            _unet_kernel,
            out_shape=jax.ShapeDtypeStruct((B, C, HW_pad), out_dtype),
            grid=grid,
            in_specs=[w_blk, bias_blk, vblk],
            out_specs=vblk,
            compiler_params=cparams,
        )(w3, bias3, x)
        return UNetOutput(sample=sample[:, :, :HW].reshape(B, C, H, W))

    res = residual_input.reshape(B, C, HW)
    if HW_pad != HW:
        res = jnp.pad(res, ((0, 0), (0, 0), (0, HW_pad - HW)))
    sample = pl.pallas_call(
        _resdiff_kernel,
        out_shape=jax.ShapeDtypeStruct((B, C, HW_pad), out_dtype),
        grid=grid,
        in_specs=[w_blk, bias_blk, smem, vblk, vblk],
        out_specs=vblk,
        compiler_params=cparams,
    )(w3, bias3, params["alpha"], x, res)
    # base_output._replace(sample=output): only the replaced sample is
    # consumed, so the fused kernel emits just the combined output.
    return UNetOutput(sample=sample[:, :, :HW].reshape(B, C, H, W))


# ----------------------------- demo / check ----------------------------------

if __name__ == "__main__":
    # TODO(synk): the real `unet` is an external module passed into __init__;
    # a deterministic synthetic stand-in is used here instead of a checkpoint.
    B, C, H, W = 2, 4, 16, 16
    S, D = 8, 32

    key = jax.random.PRNGKey(0)
    k_lat, k_ctx, k_res, k_par = jax.random.split(key, 4)

    latents = jax.random.normal(k_lat, (B, C, H, W), jnp.float32)
    timesteps = jnp.array([10, 250], dtype=jnp.int32)
    context = jax.random.normal(k_ctx, (B, S, D), jnp.float32)
    residual_input = jax.random.normal(k_res, (B, C, H, W), jnp.float32)

    params = init_params(k_par, C, D)

    # Kernel: with and without residual (both variants exercised).
    out_res = residual_diffusion_forward(params, latents, timesteps, context,
                                         residual_input)
    out_base = residual_diffusion_forward(params, latents, timesteps, context,
                                          None)
    out_res_sample = jax.block_until_ready(out_res.sample)
    out_base_sample = jax.block_until_ready(out_base.sample)

    # Pure-JAX reference (NCHW throughout).
    t_emb = timesteps.astype(jnp.float32)[:, None] * params["w_time"][None, :]
    cond = t_emb + jnp.mean(context, axis=1) @ params["w_ctx"]        # [B, C]
    h = jnp.einsum("bchw,cd->bdhw", latents, params["w_mix"])
    h = h + params["b_mix"][None, :, None, None] + cond[:, :, None, None]
    h = h * jax.nn.sigmoid(h)                                          # SiLU
    ref_base = h
    ref_res = h + params["alpha"][0] * residual_input

    assert out_res_sample.shape == (B, C, H, W)
    assert out_base_sample.shape == (B, C, H, W)
    assert jnp.allclose(out_res_sample, ref_res, atol=1e-5, rtol=1e-5)
    assert jnp.allclose(out_base_sample, ref_base, atol=1e-5, rtol=1e-5)

    print("KERNEL_OK")
</pallas_src>

<mosaic_0001>
module attributes {stable_mosaic.version = 11 : i64} {
  func.func @_resdiff_kernel(%arg0: i32, %arg1: i32, %arg2: memref<4x4x1xf32, #tpu.memory_space<vmem>>, %arg3: memref<1x4x1xf32, #tpu.memory_space<vmem>>, %arg4: memref<1xf32, #tpu.memory_space<smem>>, %arg5: memref<1x4x256xf32, #tpu.memory_space<vmem>>, %arg6: memref<1x4x256xf32, #tpu.memory_space<vmem>>, %arg7: memref<1x4x256xf32, #tpu.memory_space<vmem>>) attributes {dimension_semantics = [#tpu.dimension_semantics<parallel>, #tpu.dimension_semantics<parallel>], iteration_bounds = array<i64: 2, 1>, scalar_prefetch = 0 : i64, scratch_operands = 0 : i64, tpu.core_type = #tpu.core_type<tc>, window_params = [{pipeline_mode = #tpu.pipeline_mode<synchronous>, transform_indices = @transform_0, window_bounds = array<i64: 4, 4, 1>}, {transform_indices = @transform_1, window_bounds = array<i64: 1, 4, 1>}, {transform_indices = @transform_2, window_bounds = array<i64: 1>}, {transform_indices = @transform_3, window_bounds = array<i64: 1, 4, 256>}, {transform_indices = @transform_4, window_bounds = array<i64: 1, 4, 256>}, {transform_indices = @transform_5, window_bounds = array<i64: 1, 4, 256>}]} {
    %c0 = arith.constant 0 : index
    %c0_0 = arith.constant 0 : index
    %c0_1 = arith.constant 0 : index
    %0 = vector.load %arg5[%c0, %c0_0, %c0_1] : memref<1x4x256xf32, #tpu.memory_space<vmem>>, vector<1x4x256xf32>
    %c0_2 = arith.constant 0 : index
    %c0_3 = arith.constant 0 : index
    %c0_4 = arith.constant 0 : index
    %1 = vector.load %arg2[%c0_2, %c0_3, %c0_4] : memref<4x4x1xf32, #tpu.memory_space<vmem>>, vector<4x4x1xf32>
    %2 = vector.extract_strided_slice %0 {offsets = [0, 0, 0], sizes = [1, 1, 256], strides = [1, 1, 1]} : vector<1x4x256xf32> to vector<1x1x256xf32>
    %3 = vector.extract_strided_slice %1 {offsets = [0, 0, 0], sizes = [1, 4, 1], strides = [1, 1, 1]} : vector<4x4x1xf32> to vector<1x4x1xf32>
    %4 = vector.broadcast %2 : vector<1x1x256xf32> to vector<1x4x256xf32>
    %5 = vector.broadcast %3 : vector<1x4x1xf32> to vector<1x4x256xf32>
    %6 = arith.mulf %4, %5 : vector<1x4x256xf32>
    %7 = vector.extract_strided_slice %0 {offsets = [0, 1, 0], sizes = [1, 1, 256], strides = [1, 1, 1]} : vector<1x4x256xf32> to vector<1x1x256xf32>
    %8 = vector.extract_strided_slice %1 {offsets = [1, 0, 0], sizes = [1, 4, 1], strides = [1, 1, 1]} : vector<4x4x1xf32> to vector<1x4x1xf32>
    %9 = vector.broadcast %7 : vector<1x1x256xf32> to vector<1x4x256xf32>
    %10 = vector.broadcast %8 : vector<1x4x1xf32> to vector<1x4x256xf32>
    %11 = arith.mulf %9, %10 : vector<1x4x256xf32>
    %12 = arith.addf %6, %11 : vector<1x4x256xf32>
    %13 = vector.extract_strided_slice %0 {offsets = [0, 2, 0], sizes = [1, 1, 256], strides = [1, 1, 1]} : vector<1x4x256xf32> to vector<1x1x256xf32>
    %14 = vector.extract_strided_slice %1 {offsets = [2, 0, 0], sizes = [1, 4, 1], strides = [1, 1, 1]} : vector<4x4x1xf32> to vector<1x4x1xf32>
    %15 = vector.broadcast %13 : vector<1x1x256xf32> to vector<1x4x256xf32>
    %16 = vector.broadcast %14 : vector<1x4x1xf32> to vector<1x4x256xf32>
    %17 = arith.mulf %15, %16 : vector<1x4x256xf32>
    %18 = arith.addf %12, %17 : vector<1x4x256xf32>
    %19 = vector.extract_strided_slice %0 {offsets = [0, 3, 0], sizes = [1, 1, 256], strides = [1, 1, 1]} : vector<1x4x256xf32> to vector<1x1x256xf32>
    %20 = vector.extract_strided_slice %1 {offsets = [3, 0, 0], sizes = [1, 4, 1], strides = [1, 1, 1]} : vector<4x4x1xf32> to vector<1x4x1xf32>
    %21 = vector.broadcast %19 : vector<1x1x256xf32> to vector<1x4x256xf32>
    %22 = vector.broadcast %20 : vector<1x4x1xf32> to vector<1x4x256xf32>
    %23 = arith.mulf %21, %22 : vector<1x4x256xf32>
    %24 = arith.addf %18, %23 : vector<1x4x256xf32>
    %c0_5 = arith.constant 0 : index
    %c0_6 = arith.constant 0 : index
    %c0_7 = arith.constant 0 : index
    %25 = vector.load %arg3[%c0_5, %c0_6, %c0_7] : memref<1x4x1xf32, #tpu.memory_space<vmem>>, vector<1x4x1xf32>
    %26 = vector.broadcast %25 : vector<1x4x1xf32> to vector<1x4x256xf32>
    %27 = arith.addf %24, %26 : vector<1x4x256xf32>
    %28 = arith.negf %27 : vector<1x4x256xf32>
    %29 = math.exp %28 : vector<1x4x256xf32>
    %cst = arith.constant 1.000000e+00 : f32
    %30 = vector.broadcast %cst : f32 to vector<1x4x256xf32>
    %31 = arith.addf %30, %29 : vector<1x4x256xf32>
    %32 = arith.divf %30, %31 : vector<1x4x256xf32>
    %33 = arith.mulf %27, %32 : vector<1x4x256xf32>
    %c0_8 = arith.constant 0 : index
    %34 = memref.load %arg4[%c0_8] : memref<1xf32, #tpu.memory_space<smem>>
    %c0_9 = arith.constant 0 : index
    %c0_10 = arith.constant 0 : index
    %c0_11 = arith.constant 0 : index
    %35 = vector.load %arg6[%c0_9, %c0_10, %c0_11] : memref<1x4x256xf32, #tpu.memory_space<vmem>>, vector<1x4x256xf32>
    %36 = vector.broadcast %34 : f32 to vector<1x4x256xf32>
    %37 = arith.mulf %36, %35 : vector<1x4x256xf32>
    %38 = arith.addf %33, %37 : vector<1x4x256xf32>
    %c0_12 = arith.constant 0 : index
    %c0_13 = arith.constant 0 : index
    %c0_14 = arith.constant 0 : index
    %39 = vector.load %arg7[%c0_12, %c0_13, %c0_14] : memref<1x4x256xf32, #tpu.memory_space<vmem>>, vector<1x4x256xf32>
    tpu.vector_store %arg7[%c0_12, %c0_13, %c0_14], %38 {strides = array<i32>} : memref<1x4x256xf32, #tpu.memory_space<vmem>>, vector<1x4x256xf32>,
    return
  }
  func.func @transform_0(%arg0: i32, %arg1: i32) -> (i32, i32, i32) {
    %c0_i32 = arith.constant 0 : i32
    %c0_i32_0 = arith.constant 0 : i32
    %c0_i32_1 = arith.constant 0 : i32
    %c0_i32_2 = arith.constant 0 : i32
    return %c0_i32, %c0_i32_0, %c0_i32_1 : i32, i32, i32
  }
  func.func @transform_1(%arg0: i32, %arg1: i32) -> (i32, i32, i32) {
    %c0_i32 = arith.constant 0 : i32
    %c0_i32_0 = arith.constant 0 : i32
    %c0_i32_1 = arith.constant 0 : i32
    return %arg0, %c0_i32, %c0_i32_0 : i32, i32, i32
  }
  func.func @transform_2(%arg0: i32, %arg1: i32) -> i32 {
    %c0_i32 = arith.constant 0 : i32
    %c0_i32_0 = arith.constant 0 : i32
    return %c0_i32 : i32
  }
  func.func @transform_3(%arg0: i32, %arg1: i32) -> (i32, i32, i32) {
    %c0_i32 = arith.constant 0 : i32
    %c0_i32_0 = arith.constant 0 : i32
    return %arg0, %c0_i32, %arg1 : i32, i32, i32
  }
  func.func @transform_4(%arg0: i32, %arg1: i32) -> (i32, i32, i32) {
    %c0_i32 = arith.constant 0 : i32
    %c0_i32_0 = arith.constant 0 : i32
    return %arg0, %c0_i32, %arg1 : i32, i32, i32
  }
  func.func @transform_5(%arg0: i32, %arg1: i32) -> (i32, i32, i32) {
    %c0_i32 = arith.constant 0 : i32
    %c0_i32_0 = arith.constant 0 : i32
    return %arg0, %c0_i32, %arg1 : i32, i32, i32
  }
}

</mosaic_0001>

<bundles_post_ra>
// kernel: tpu_custom_call.1
= control target key start
LH: loop header
LB: loop body
LE: loop exit
PB: predicated region body
PF: predicated region fallthrough
CT: control target
= control target key end

     0   :  { %s904_s0 = inlined_call_operand.vmem [shape: f32[4,4,1], index: 0, kind: input, shape index: {}]   ;;  %s905_s1 = inlined_call_operand.vmem [shape: f32[2,4,1], index: 1, kind: input, shape index: {}]   ;;  %s906_s2 = inlined_call_operand.<no memory space> [shape: f32[1], index: 2, kind: input, shape index: {}]   ;;  %s907_s3 = inlined_call_operand.vmem [shape: f32[2,4,256], index: 3, kind: input, shape index: {}]   ;;  %s908_s4 = inlined_call_operand.vmem [shape: f32[2,4,256], index: 4, kind: input, shape index: {}]   ;;  %s909_s5 = inlined_call_operand.hbm [shape: f32[2,4,256], index: 5, kind: output, shape index: {}]  }
   0x1   :  { %10 = sst [smem:[#allocation2]] %s906_s2 }
   0x2   :  { %11 = vsyncpa [#allocation4], 0 }
   0x3   :  { %13 = vsyncpa [#allocation4 + $0x1], 0  ;;  %s779_s20 = smov 0   ;;  %s781_s21 = smov 0  }
   0x4   :  { %s783_s22 = smov 0   ;;  %s785_s23 = smov 0  }
   0x5   :  { %s787_s24 = smov 0   ;;  %s789_s25 = smov 0  }
   0x6 LB: > { %s579_s2 = sadd.s32 4294967295, %s742_s25   ;;  %s580_s26 = sadd.s32 4294967294, %s742_s25   ;;  %s742_s25 = sphi %s789_s25, %s19_s25   ;;  %s738_s24 = sphi %s787_s24, %s916_s24   ;;  %s734_s23 = sphi %s785_s23, %s915_s23   ;;  %s730_s22 = sphi %s783_s22, %s914_s22   ;;  %s726_s21 = sphi %s781_s21, %s913_s21   ;;  %s722_s20 = sphi %s779_s20, %s912_s20  }
   0x7   : > { %s31_s27 = sadd.s32 1, %s738_s24  ;;  %s164_s28 = sadd.s32 1, %s730_s22 }
   0x8   : > { %p33_p0 = scmp.ge.s32.totalorder %s31_s27, 2  ;;  %p174_p1 = scmp.ne.s32.totalorder %s730_s22, %s726_s21 }
   0x9   : > { %p175_p2 = scmp.eq.s32.totalorder %s579_s2, 1  ;;  %p180_p3 = scmp.ne.s32.totalorder %s726_s21, %s722_s20 }
   0xa   : > { %s918_s27 = smov (%p33_p0, %s31_s27), 0  ;;  %p181_p5 = scmp.eq.s32.totalorder %s580_s26, 1 }
   0xb   : > { %p819_p4 = por %p175_p2, %p174_p1  ;;  %s159_s30 = ssub.s32 %s738_s24, %s918_s27 }
   0xc   : > { %p583_p6 = scmp.ge.s32.totalorder %s742_s25, 1  ;;  %p162_p7 = scmp.eq.s32.totalorder %s159_s30, 0 }
   0xd   : > { %p826_p8 = por %p181_p5, %p180_p3  ;;  %p238_p9 = scmp.lt.s32.totalorder %s742_s25, 3 }
   0xe   : > { %s832_s7 = scalar_select %p162_p7, %s730_s22, %s164_s28  }
   0xf   : > { %p239_p10 = pnand %p583_p6, %p238_p9 }
  0x10   : > { %p283_p11 = scmp.lt.s32.totalorder (!%p239_p10), %s734_s23, 1  ;;  %s442_s9 = sld [smem:[#allocation2]] (!%p239_p10) }
  0x11   : > { %242 = sbr.rel (%p239_p10) target bundleno = 214 (0xd6), region = 40  ;;  %s280_s14 = sand.u32 (!%p239_p10), 1, %s726_s21  }
  0x12   : > { %s584_s15 = sshll.u32 (!%p239_p10), %s280_s14, 3  ;;  %s599_s16 = sshll.u32 (!%p239_p10), %s734_s23, 7 }
  0x13   : > { %s745_s30 = smov (!%p239_p10), [#allocation3]  }
  0x16   : > { %v311_v0 = vld [vmem:[%s904_s0 + $0x8] sm:$0xf]  ;;  %v309_v1 = vld [vmem:[%s904_s0] sm:$0xf]  ;;  %v744_v2 = vmov 0   ;;  %s842_s12 = scalar_select %p283_p11, %s734_s23, 1  ;;  %v314_v6 = vlaneseq  ;;  %v444_v61 = vstv %s442_s9 }
  0x17   : > { %657 = vset.pattern.permute.xlu1 %v744_v2  ;;  %656 = vset.pattern.permute.xlu0 %v744_v2  ;;  %v312_v3 = vld [vmem:[%s904_s0 + $0xc] sm:$0xf]  ;;  %v310_v4 = vld [vmem:[%s904_s0 + $0x4] sm:$0xf] }
  0x18   : > { %386 = vperm.xlu1 %657, %v311_v0   ;;  %334 = vperm.xlu0 %656, %v309_v1   ;;  %s585_s17 = sshll.u32 %s842_s12, 2  ;;  %s597_s26 = sshll.u32 %s842_s12, 3  ;;  %v315_v7 = vshrl.u32 %v314_v6, 7 }
  0x19   : > { %s286_s2 = scalar_lea.vmem %s905_s1, %s585_s17  ;;  %s295_s8 = scalar_lea.vmem %s907_s3, %s597_s26 }
  0x1a   : > { %v420_v5 = vld [vmem:[%s286_s2] sm:$0xf]  ;;  %v316_v8 = vsub.s32 0, %v315_v7  ;;  %v320_v9 = vsub.s32 4, %v315_v7  ;;  %v341_v10 = vsub.s32 1, %v315_v7  ;;  %v345_v11 = vsub.s32 5, %v315_v7  ;;  %s305_s13 = scalar_lea.vmem %s908_s4, %s597_s26  ;;  %s471_s2 = scalar_lea.hbm %s909_s5, %s599_s16 }
  0x1b   : > { %v308_v12 = vld [vmem:[%s295_s8] sm:$0xff]  ;;  %v368_v13 = vsub.s32 2, %v315_v7  ;;  %v372_v14 = vsub.s32 6, %v315_v7  ;;  %v395_v15 = vsub.s32 3, %v315_v7  ;;  %v399_v16 = vsub.s32 7, %v315_v7  ;;  %s282_s17 = scalar_lea.vmem [#allocation3], %s584_s15 }
  0x1c   : > { %413 = vperm.xlu1 %657, %v312_v3   ;;  %359 = vperm.xlu0 %656, %v310_v4   ;;  %v317_v17 = vrot.slane %v308_v12, %v316_v8  ;;  %v321_v18 = vrot.slane %v308_v12, %v320_v9  ;;  %v342_v19 = vrot.slane %v308_v12, %v341_v10  ;;  %v443_v60 = vld [vmem:[%s305_s13] sm:$0xff]  ;;  %s473_s18 = sshll.u32 %s282_s17, 4  ;;  %s457_s26 = scalar_lea.sflag [#allocation4], %s280_s14  ;;  %s474_s18 = int_to_ptr.vmem [resolvable:$true] %s473_s18 }
  0x1d   : > { %v346_v20 = vrot.slane %v308_v12, %v345_v11  ;;  %v369_v21 = vrot.slane %v308_v12, %v368_v13  ;;  %v373_v22 = vrot.slane %v308_v12, %v372_v14  ;;  %v396_v25 = vrot.slane %v308_v12, %v395_v15  ;;  %s666_s28 = scalar_lea.vmem %s474_s18, 128  ;;  %s670_s8 = sshll.u32 %s745_s30, 4  ;;  %s671_s8 = int_to_ptr.vmem [resolvable:$false] %s670_s8 }
  0x1e   : > { %v400_v26 = vrot.slane %v308_v12, %v399_v16  ;;  %v327_v27 = vrot.slane %v317_v17, %v316_v8  ;;  %v331_v28 = vrot.slane %v321_v18, %v316_v8  ;;  %v352_v29 = vrot.slane %v342_v19, %v341_v10  ;;  %p667_p12 = scmp.ne.s32.totalorder %s474_s18, %s666_s28  ;;  %s672_s23 = scalar_lea.vmem %s671_s8, 256 }
  0x1f   : > { %v356_v30 = vrot.slane %v346_v20, %v341_v10  ;;  %v379_v31 = vrot.slane %v369_v21, %v368_v13  ;;  %v383_v32 = vrot.slane %v373_v22, %v368_v13  ;;  %v406_v33 = vrot.slane %v396_v25, %v395_v15  ;;  %p673_p1 = scmp.lt.s32.totalorder %s474_s18, %s671_s8  ;;  %p674_p2 = scmp.lt.s32.totalorder %s672_s23, %s666_s28 }
  0x20   : > { %423 = vperm.xlu0 %656, %v420_v5   ;;  %v410_v34 = vrot.slane %v400_v26, %v395_v15  ;;  %v445_v62 = vmul.f32 %v444_v61, %v443_v60  ;;  %p668_p13 = pnand %p667_p12, %p819_p4 }
  0x21   : > { %p675_p3 = por %p674_p2, %p673_p1 }
  0x22   : > { %v447_v0 = vcombine.high %v445_v62, %v445_v62  ;;  %p669_p0 = pneg %p668_p13 }
  0x24   : > { %p676_p5 = pnand %p675_p3, %p669_p0 }
  0x93   : > { %v387_v23 = vpop.permute.xlu1 %386  ;;  %v335_v24 = vpop.permute.xlu0 %334 }
  0x94   : > { %v337_v36 = vmul.f32 %v335_v24, %v327_v27  ;;  %v338_v37 = vmul.f32 %v335_v24, %v331_v28  ;;  %v389_v41 = vmul.f32 %v387_v23, %v379_v31  ;;  %v390_v42 = vmul.f32 %v387_v23, %v383_v32 }
  0x97   : > { %v360_v35 = vpop.permute.xlu0 %359  ;;  %v414_v40 = vpop.permute.xlu1 %413 }
  0x98   : > { %v362_v38 = vmul.f32 %v360_v35, %v352_v29  ;;  %v363_v39 = vmul.f32 %v360_v35, %v356_v30  ;;  %v416_v45 = vmul.f32 %v414_v40, %v406_v33  ;;  %v417_v46 = vmul.f32 %v414_v40, %v410_v34 }
  0x9a   : > { %v364_v43 = vadd.f32 %v362_v38, %v337_v36  ;;  %v365_v44 = vadd.f32 %v363_v39, %v338_v37 }
  0x9b   : > { %v424_v51 = vpop.permute.xlu0 %423 }
  0x9c   : > { %v391_v47 = vadd.f32 %v389_v41, %v364_v43  ;;  %v392_v48 = vadd.f32 %v390_v42, %v365_v44 }
  0x9e   : > { %v418_v49 = vadd.f32 %v416_v45, %v391_v47  ;;  %v419_v50 = vadd.f32 %v417_v46, %v392_v48 }
  0xa0   : > { %v426_v52 = vadd.f32 %v424_v51, %v418_v49  ;;  %v427_v53 = vadd.f32 %v424_v51, %v419_v50 }
  0xa2   : > { %v590_v54 = vmul.f32 -1.442695, %v426_v52  ;;  %v591_v55 = vmul.f32 -1.442695, %v427_v53 }
  0xa4   : > { %658 = vpow2.f32 %v590_v54 }
  0xa5   : > { %660 = vpow2.f32 %v591_v55 }
  0xb1   : > { %v659_v56 = vpop.eup %658 }
  0xb2   : > { %v661_v57 = vpop.eup %660  ;;  %v434_v58 = vadd.f32 1.0, %v659_v56 }
  0xb3   : > { %v435_v59 = vadd.f32 1.0, %v661_v57 }
  0xb4   : > { %662 = vrcp.f32 %v434_v58 }
  0xb5   : > { %664 = vrcp.f32 %v435_v59 }
  0xc1   : > { %v663_v63 = vpop.eup %662 }
  0xc2   : > { %v665_v1 = vpop.eup %664  ;;  %v440_v2 = vmul.f32 %v663_v63, %v426_v52 }
  0xc3   : > { %v441_v3 = vmul.f32 %v665_v1, %v427_v53 }
  0xc4   : > { %v449_v4 = vadd.f32 %v445_v62, %v440_v2 }
  0xc5   : > { %v450_v5 = vadd.f32 %v447_v0, %v441_v3 }
  0xc7   : > { %v453_v6 = vcombine.low %v449_v4, %v450_v5 }
  0xc9   : > { %455 = vst [vmem:[%s282_s17] sm:$0xff] %v453_v6 }
  0xca   : > { %679 = shalt.err (!%p676_p5)
}
  0xcb   : > { %s680_s9 = scalar_lea.hbm %s471_s2, 128  ;;  %s684_s13 = scalar_lea.hbm %s909_s5, 256 }
  0xcc   : > { %p681_p6 = scmp.ne.s32.totalorder %s471_s2, %s680_s9  ;;  %p685_p10 = scmp.lt.s32.totalorder %s471_s2, %s909_s5 }
  0xcd   : > { %p686_p11 = scmp.lt.s32.totalorder %s684_s13, %s680_s9 }
  0xce   : > { %p682_p7 = pnand %p681_p6, %p819_p4 }
  0xcf   : > { %p687_p12 = por %p686_p11, %p685_p10 }
  0xd0   : > { %p683_p9 = pneg %p682_p7 }
  0xd2   : > { %p688_p13 = pnand %p687_p12, %p683_p9 }
  0xd4   : > { %691 = shalt.err (!%p688_p13)
}
  0xd5   : > { %600 = dma.vmem_to_hbm [thread:$0]  (%p819_p4), %s474_s18, 128, %s471_s2, %s457_s26  }
  0xd6 PF: > { %p606_p0 = scmp.ge.s32.totalorder %s742_s25, 2  ;;  %s485_s16 = sand.u32 1, %s722_s20  }
  0xd7   : > { %s486_s17 = scalar_lea.sflag [#allocation4], %s485_s16 }
  0xd8   : > { %p603_p1 = pnand %p606_p0, %p826_p8 }
  0xda   : > { %p604_p2 = pneg %p603_p1 }
  0xdc   : > { %717 = dma.done.wait (%p604_p2), %s486_s17, 128  }
  0xdd   : > { %719 = vsyncadd (%p604_p2), %s486_s17, 4294967168  ;;  %s19_s25 = sadd.s32 1, %s742_s25   ;;  %s912_s20 = smov %s726_s21 }
  0xde   : > { %p16_p3 = scmp.ge.s32.totalorder %s19_s25, 4   ;;  %s913_s21 = smov %s730_s22 }
  0xdf   : > { %s914_s22 = smov %s832_s7  ;;  %s915_s23 = smov %s738_s24 }
  0xe0   : > { %s916_s24 = smov %s918_s27  ;;  %18 = sbr.rel (!%p16_p3) target bundleno = 6 (0x6), region = 81 }
  0xe5   :  { %491 = vsyncpa [#allocation4], 1 }
  0xe6   :  { %493 = vsyncpa [#allocation4 + $0x1], 1 }

</bundles_post_ra>
